<compile_context>
chip_gen: v6e
topology: v6e:2x2x1
jax: 0.10.0
libtpu: 0.0.40
codegen_flags: <defaults>
</compile_context>

<pallas_src>
import math

import jax
import jax.numpy as jnp
from jax.experimental import pallas as pl
from jax.experimental.pallas import tpu as pltpu

_TARGET_TILE_BYTES = 2 * 1024 * 1024   # ~2 MiB per input tile; x2 arrays x2 buffers ~ 8 MiB VMEM
_MAX_DIRECT_COLS = 8192                # wider last dims fall back to the flattened view


def _hsigmoid_kernel(x_ref, o_ref):
    # relu6(1.2*x + 3.0) / 6.0 -- VPU-only work, fully hidden behind the HBM DMAs.
    x = x_ref[...]
    o_ref[...] = (jnp.clip(x * 1.2 + 3.0, 0.0, 6.0) / 6.0).astype(o_ref.dtype)


def _tile_rows(rows: int, cols: int, itemsize: int) -> int:
    """Rows per block: ~_TARGET_TILE_BYTES per tile, sublane-aligned, grid >= 2 when possible."""
    sub = max(8, 32 // itemsize)               # packed sublane multiple: 8 f32, 16 bf16, 32 int8
    if rows <= sub:
        return rows                            # single block == full dim (always legal)
    tm = max(sub, (_TARGET_TILE_BYTES // (cols * itemsize)) // sub * sub)
    # Cap so the grid has at least 2 roughly balanced steps (v7x 2-TC / megacore split).
    half = math.ceil(math.ceil(rows / 2) / sub) * sub
    return min(tm, half)


def _run_2d(x2d: jax.Array) -> jax.Array:
    rows, cols = x2d.shape
    itemsize = jnp.dtype(x2d.dtype).itemsize
    tm = _tile_rows(rows, cols, itemsize)
    grid = (pl.cdiv(rows, tm),)                # partial last block is masked by Pallas
    n = rows * cols
    return pl.pallas_call(
        _hsigmoid_kernel,
        out_shape=jax.ShapeDtypeStruct((rows, cols), x2d.dtype),
        grid=grid,
        in_specs=[pl.BlockSpec((tm, cols), lambda i: (i, 0))],
        out_specs=pl.BlockSpec((tm, cols), lambda i: (i, 0)),
        compiler_params=pltpu.CompilerParams(
            dimension_semantics=("parallel",),
        ),
        cost_estimate=pl.CostEstimate(
            flops=3 * n, transcendentals=0, bytes_accessed=2 * n * itemsize),
    )(x2d)


def _hsigmoid_jnp(v: jax.Array) -> jax.Array:
    return jnp.clip(v * 1.2 + 3.0, 0.0, 6.0) / 6.0


def hsigmoid(x: jax.Array) -> jax.Array:
    """Applies relu6(1.2*x + 3.0)/6.0 elementwise (Hsigmoid.forward)."""
    # PyTorch promotes integer tensors to float via `1.2 * x`; mirror that here.
    if not jnp.issubdtype(x.dtype, jnp.floating):
        x = x.astype(jnp.float32)

    orig_shape = x.shape
    n = math.prod(orig_shape) if orig_shape else 1
    if n == 0:
        return x

    # Fast path A: last dim already lane-dense (multiple of 128) -> zero-copy collapse.
    if (x.ndim >= 2 and orig_shape[-1] % 128 == 0
            and 0 < orig_shape[-1] <= _MAX_DIRECT_COLS):
        cols = orig_shape[-1]
        out = _run_2d(x.reshape(n // cols, cols))
        return out.reshape(orig_shape)

    # Fast path B: total size divides a lane-dense width -> zero-copy flatten + reshape.
    x_flat = x.reshape(-1)
    for cols in (1024, 256, 128):
        if n % cols == 0:
            out = _run_2d(x_flat.reshape(n // cols, cols))
            return out.reshape(orig_shape)

    # Ragged fallback: kernel on the 1024-aligned bulk, plain jnp on the <1024-element tail
    # (no full-array pad / slice).
    bulk_rows = n // 1024
    if bulk_rows == 0:
        return _hsigmoid_jnp(x)                # tiny input: not worth a kernel launch
    bulk_n = bulk_rows * 1024
    bulk_out = _run_2d(x_flat[:bulk_n].reshape(bulk_rows, 1024)).reshape(-1)
    tail_out = _hsigmoid_jnp(x_flat[bulk_n:])
    return jnp.concatenate([bulk_out, tail_out]).reshape(orig_shape)


if __name__ == "__main__":
    key = jax.random.PRNGKey(0)

    # Small NCHW input consistent with a conv activation: batch=2, channels=4, 16x16 spatial.
    x = jax.random.normal(key, (2, 4, 16, 16), dtype=jnp.float32) * 3.0
    y = jax.block_until_ready(hsigmoid(x))
    y_ref = jnp.clip(1.2 * x + 3.0, 0.0, 6.0) / 6.0
    assert y.shape == x.shape and y.dtype == x.dtype
    assert jnp.allclose(y, y_ref, atol=1e-6), "f32 mismatch vs reference"

    # Exercise the lane-dense fast path + multi-step grid (rows=1024, cols=256, grid=2).
    x2 = jax.random.normal(jax.random.PRNGKey(0), (8, 128, 256), dtype=jnp.float32) * 3.0
    y2 = jax.block_until_ready(hsigmoid(x2))
    y2_ref = jnp.clip(1.2 * x2 + 3.0, 0.0, 6.0) / 6.0
    assert jnp.allclose(y2, y2_ref, atol=1e-6), "f32 fast-path mismatch vs reference"

    # bf16 sanity check (dtype-aware tolerance).
    xb = x.astype(jnp.bfloat16)
    yb = jax.block_until_ready(hsigmoid(xb))
    yb_ref = jnp.clip(xb * 1.2 + 3.0, 0.0, 6.0) / 6.0
    assert yb.dtype == jnp.bfloat16
    assert jnp.allclose(yb.astype(jnp.float32), yb_ref.astype(jnp.float32), atol=1e-2)

    print("KERNEL_OK")
</pallas_src>

<mosaic_0001>
module attributes {stable_mosaic.version = 11 : i64} {
  func.func @_hsigmoid_kernel(%arg0: i32, %arg1: memref<2x1024xf32, #tpu.memory_space<vmem>>, %arg2: memref<2x1024xf32, #tpu.memory_space<vmem>>) attributes {dimension_semantics = [#tpu.dimension_semantics<parallel>], iteration_bounds = array<i64: 1>, scalar_prefetch = 0 : i64, scratch_operands = 0 : i64, tpu.core_type = #tpu.core_type<tc>, window_params = [{transform_indices = @transform_0, window_bounds = array<i64: 2, 1024>}, {transform_indices = @transform_1, window_bounds = array<i64: 2, 1024>}]} {
    %c0 = arith.constant 0 : index
    %c0_0 = arith.constant 0 : index
    %0 = vector.load %arg1[%c0, %c0_0] : memref<2x1024xf32, #tpu.memory_space<vmem>>, vector<2x1024xf32>
    %cst = arith.constant 1.200000e+00 : f32
    %1 = vector.broadcast %cst : f32 to vector<2x1024xf32>
    %2 = arith.mulf %0, %1 : vector<2x1024xf32>
    %cst_1 = arith.constant 3.000000e+00 : f32
    %3 = vector.broadcast %cst_1 : f32 to vector<2x1024xf32>
    %4 = arith.addf %2, %3 : vector<2x1024xf32>
    %cst_2 = arith.constant 0.000000e+00 : f32
    %cst_3 = arith.constant 6.000000e+00 : f32
    %5 = vector.broadcast %cst_2 : f32 to vector<2x1024xf32>
    %6 = arith.maximumf %5, %4 : vector<2x1024xf32>
    %7 = vector.broadcast %cst_3 : f32 to vector<2x1024xf32>
    %8 = arith.minimumf %7, %6 : vector<2x1024xf32>
    %cst_4 = arith.constant 6.000000e+00 : f32
    %9 = vector.broadcast %cst_4 : f32 to vector<2x1024xf32>
    %10 = arith.divf %8, %9 : vector<2x1024xf32>
    %c0_5 = arith.constant 0 : index
    %c0_6 = arith.constant 0 : index
    %11 = vector.load %arg2[%c0_5, %c0_6] : memref<2x1024xf32, #tpu.memory_space<vmem>>, vector<2x1024xf32>
    tpu.vector_store %arg2[%c0_5, %c0_6], %10 {strides = array<i32>} : memref<2x1024xf32, #tpu.memory_space<vmem>>, vector<2x1024xf32>,
    return
  }
  func.func @transform_0(%arg0: i32) -> (i32, i32) {
    %c0_i32 = arith.constant 0 : i32
    %c0_i32_0 = arith.constant 0 : i32
    return %arg0, %c0_i32 : i32, i32
  }
  func.func @transform_1(%arg0: i32) -> (i32, i32) {
    %c0_i32 = arith.constant 0 : i32
    %c0_i32_0 = arith.constant 0 : i32
    return %arg0, %c0_i32 : i32, i32
  }
}

</mosaic_0001>

<bundles_post_ra>
// kernel: tpu_custom_call.1
= control target key start
LH: loop header
LB: loop body
LE: loop exit
PB: predicated region body
PF: predicated region fallthrough
CT: control target
= control target key end

     0   :  { %6 = vsyncpa [#allocation3], 0  ;;  %s115_s0 = inlined_call_operand.hbm [shape: f32[2,1024], index: 0, kind: input, shape index: {}]   ;;  %s116_s1 = inlined_call_operand.hbm [shape: f32[2,1024], index: 1, kind: output, shape index: {}]  }
   0x1   :  { %7 = vsyncpa [#allocation4], 0  ;;  %s97_s6 = smov [#allocation2]  }
   0x2   :  { %s14_s7 = sshll.u32 %s97_s6, 4  ;;  %s15_s7 = int_to_ptr.vmem [resolvable:$true] %s14_s7 }
   0x3   :  { %s61_s8 = scalar_lea.vmem %s15_s7, 256  ;;  %p66_p1 = scmp.lt.s32.totalorder %s15_s7, %s15_s7 }
   0x4   :  { %p62_p0 = scmp.ne.s32.totalorder %s15_s7, %s61_s8  ;;  %p67_p2 = scmp.lt.s32.totalorder %s61_s8, %s61_s8 }
   0x6   :  { %p68_p3 = por %p67_p2, %p66_p1 }
   0x8   :  { %p69_p4 = pnand %p68_p3, %p62_p0 }
   0xa   :  { %72 = shalt.err (!%p69_p4)
}
   0xb   :  { %17 = dma.hbm_to_vmem [thread:$0]  %s115_s0, 256, %s15_s7, [#allocation3]  }
   0xc   :  { %93 = dma.done.wait [#allocation3], 256  }
   0xd   :  { %94 = vsyncadd [#allocation3], 4294967040  ;;  %v21_v0 = vld [vmem:[#allocation2] sm:$0xff]  ;;  %v22_v1 = vld [vmem:[#allocation2 + $0x8] sm:$0xff]  ;;  %s98_s11 = smov [#allocation5]  }
   0xe   :  { %v23_v2 = vmul.f32 1.2, %v21_v0  ;;  %v24_v3 = vmul.f32 1.2, %v22_v1  ;;  %s42_s12 = sshll.u32 %s98_s11, 4  ;;  %s43_s12 = int_to_ptr.vmem [resolvable:$true] %s42_s12 }
   0xf   :  { %s73_s0 = scalar_lea.vmem %s43_s12, 256  ;;  %p78_p6 = scmp.lt.s32.totalorder %s43_s12, %s43_s12 }
  0x10   :  { %v25_v4 = vadd.f32 3.0, %v23_v2  ;;  %v26_v5 = vadd.f32 3.0, %v24_v3  ;;  %p74_p5 = scmp.ne.s32.totalorder %s43_s12, %s73_s0  ;;  %p79_p7 = scmp.lt.s32.totalorder %s73_s0, %s73_s0 }
  0x12   :  { %v27_v6 = vmax.f32 %v25_v4, 0.0  ;;  %v28_v7 = vmax.f32 %v26_v5, 0.0  ;;  %p80_p8 = por %p79_p7, %p78_p6 }
  0x14   :  { %v29_v8 = vmin.f32 %v27_v6, 6.0  ;;  %v30_v9 = vmin.f32 %v28_v7, 6.0  ;;  %p81_p9 = pnand %p80_p8, %p74_p5 }
  0x16   :  { %v32_v10 = vmul.f32 0.16666667, %v29_v8  ;;  %v33_v11 = vmul.f32 0.16666667, %v30_v9 }
  0x18   :  { %34 = vst [vmem:[#allocation5] sm:$0xff] %v32_v10  ;;  %35 = vst [vmem:[#allocation5 + $0x8] sm:$0xff] %v33_v11 }
  0x19   :  { %84 = shalt.err (!%p81_p9)
}
  0x1a   :  { %45 = dma.vmem_to_hbm [thread:$0]  %s43_s12, 256, %s116_s1, [#allocation4]  }
  0x1b   :  { %95 = dma.done.wait [#allocation4], 256  }
  0x1c   :  { %96 = vsyncadd [#allocation4], 4294967040 }
  0x1d   :  { %49 = vsyncpa [#allocation3], 1 }
  0x1e   :  { %50 = vsyncpa [#allocation4], 1 }

</bundles_post_ra>
